<compile_context>
chip_gen: v5e
topology: v5e:2x2
jax: 0.10.0
libtpu: 0.0.40
codegen_flags: <defaults>
</compile_context>

<pallas_src>
import functools

import jax
import jax.numpy as jnp
from jax.experimental import pallas as pl
from jax.experimental.pallas import tpu as pltpu


_TARGET_BUF_BYTES = 4 * 1024 * 1024   # per-step input block (~DMA saturation point)
_MIN_STEP_BYTES = 512 * 1024          # don't shrink blocks below this just for step count
_TARGET_STEPS = 8                     # pipelining depth / v7x dual-TC sharding target


def _concat_pool_kernel(x_ref, mx_ref, av_ref, max_sc, sum_sc, *, inv_hw):
    # x_ref : (tb, tc, thw) block in VMEM -- reduce over the lane (HW) axis.
    # mx_ref: (tb, 1, tc) max output block (written only at the last HW step).
    # av_ref: (tb, 1, tc) avg output block (written only at the last HW step).
    # max_sc/sum_sc: (tb, tc) f32 accumulators persisting across the HW axis.
    k = pl.program_id(2)

    @pl.when(k == 0)
    def _():
        max_sc[...] = jnp.full_like(max_sc, -jnp.inf)
        sum_sc[...] = jnp.zeros_like(sum_sc)

    x = x_ref[...]                                              # (tb, tc, thw)
    # Max in the native dtype (tiny result cast to f32), sum accumulated in f32
    # without materializing a whole-block f32 temporary.
    max_sc[...] = jnp.maximum(max_sc[...],
                              jnp.max(x, axis=-1).astype(jnp.float32))
    sum_sc[...] = sum_sc[...] + jnp.sum(x, axis=-1, dtype=jnp.float32)

    @pl.when(k == pl.num_programs(2) - 1)
    def _():
        mx_ref[...] = max_sc[...][:, None, :].astype(mx_ref.dtype)
        av_ref[...] = (sum_sc[...] * inv_hw)[:, None, :].astype(av_ref.dtype)


def _vmem_budget():
    """VMEM limit derived from the chip (v5e/v6e: 128 MiB, v7x: 64 MiB per TC)."""
    try:
        cap = pltpu.get_tpu_info().vmem_capacity_bytes
    except Exception:
        cap = 64 * 1024 * 1024          # conservative default (v7x per-TC physical)
    return (3 * cap) // 4               # leave 25% headroom for the compiler


def _padded_bytes(shape, itemsize):
    """Rough VMEM footprint of one buffer with (8, 128) tile padding."""
    s = list(shape)
    if len(s) >= 2:
        s[-2] = -(-s[-2] // 8) * 8
    s[-1] = -(-s[-1] // 128) * 128
    n = 1
    for d in s:
        n *= d
    return n * itemsize


def _choose_tiles(N, C, HW, itemsize, target_buf):
    """Pick (tb, tc, thw) tiles for the (N, C, HW) input.

    Layout constraints (last two block dims divisible by (8, 128) or == full):
      * input block (tb, tc, thw): tc % 8 == 0 or tc == C; thw % 128 == 0 or thw == HW
      * output block (tb, 1, tc) : tc % 128 == 0 or tc == C
      => tc in {C} | {128-multiples dividing C}; thw in {HW} | {128-mult. dividing HW};
         tb may be any divisor of N.
    """
    def bufb(b, c, h):
        return b * c * h * itemsize

    tb_opts = sorted(d for d in range(1, N + 1) if N % d == 0)
    tc_opts = sorted({C} | {d for d in range(128, C, 128) if C % d == 0})
    thw_opts = sorted({HW} | {d for d in range(128, HW, 128) if HW % d == 0})

    tb, tc, thw = N, C, HW

    # Shrink to fit the per-step buffer target: batch first (parallel axis),
    # then channels (parallel axis), and only then the HW reduction axis.
    if bufb(tb, tc, thw) > target_buf:
        fit = [d for d in tb_opts if bufb(d, tc, thw) <= target_buf]
        tb = max(fit) if fit else 1
    if bufb(tb, tc, thw) > target_buf:
        fit = [d for d in tc_opts if bufb(tb, d, thw) <= target_buf]
        tc = max(fit) if fit else min(tc_opts)
    if bufb(tb, tc, thw) > target_buf:
        fit = [d for d in thw_opts if bufb(tb, tc, d) <= target_buf]
        thw = max(fit) if fit else min(thw_opts)

    # Keep several grid steps along the *parallel* axes (v7x second TensorCore,
    # DMA/compute overlap) as long as per-step blocks stay reasonably large.
    def n_steps():
        return (N // tb) * (C // tc) * (HW // thw)

    def next_smaller(cur, opts):
        smaller = [d for d in opts if d < cur]
        return max(smaller) if smaller else None

    while n_steps() < _TARGET_STEPS:
        cands = []
        nb = next_smaller(tb, tb_opts)
        if nb is not None and bufb(nb, tc, thw) >= _MIN_STEP_BYTES:
            cands.append(("b", nb, bufb(nb, tc, thw)))
        nc = next_smaller(tc, tc_opts)
        if nc is not None and bufb(tb, nc, thw) >= _MIN_STEP_BYTES:
            cands.append(("c", nc, bufb(tb, nc, thw)))
        if not cands:
            break
        axis, val, _ = max(cands, key=lambda t: t[2])
        if axis == "b":
            tb = val
        else:
            tc = val

    return tb, tc, thw


def adaptive_concat_pool2d(x):
    """x: (N, C, H, W) -> (N, 2*C, 1, 1), channels = [max ; avg] (torch order)."""
    N, C, H, W = x.shape
    HW = H * W

    # Free (layout-preserving) reshape: no transpose, no extra HBM traffic.
    x_flat = x.reshape(N, C, HW)

    vmem_limit = _vmem_budget()
    itemsize = jnp.dtype(x.dtype).itemsize
    tb, tc, thw = _choose_tiles(N, C, HW, itemsize, _TARGET_BUF_BYTES)

    # VMEM accounting: double-buffered input, double-buffered (tiny) outputs,
    # plus f32 scratch accumulators.  Fail loudly instead of over-committing.
    in_b = _padded_bytes((tb, tc, thw), itemsize)
    out_b = _padded_bytes((tb, 1, tc), itemsize)
    sc_b = _padded_bytes((tb, tc), 4)
    est = 2 * in_b + 2 * 2 * out_b + 2 * sc_b
    if est > vmem_limit:
        raise ValueError(
            f"AdaptiveConcatPool2d: smallest legal tile ({tb},{tc},{thw}) needs "
            f"~{est} bytes of VMEM but only {vmem_limit} are available.")

    grid = (N // tb, C // tc, HW // thw)
    kernel = functools.partial(_concat_pool_kernel, inv_hw=1.0 / HW)

    mx_out, av_out = pl.pallas_call(
        kernel,
        out_shape=(jax.ShapeDtypeStruct((N, 1, C), x.dtype),
                   jax.ShapeDtypeStruct((N, 1, C), x.dtype)),
        grid_spec=pltpu.PrefetchScalarGridSpec(
            num_scalar_prefetch=0,
            grid=grid,
            in_specs=[pl.BlockSpec((tb, tc, thw), lambda i, j, k: (i, j, k))],
            out_specs=[pl.BlockSpec((tb, 1, tc), lambda i, j, k: (i, 0, j)),
                       pl.BlockSpec((tb, 1, tc), lambda i, j, k: (i, 0, j))],
            scratch_shapes=[pltpu.VMEM((tb, tc), jnp.float32),
                            pltpu.VMEM((tb, tc), jnp.float32)],
        ),
        compiler_params=pltpu.CompilerParams(
            # batch / channel tiles are independent (shardable across v7x's two
            # TensorCores); the HW axis carries the reduction accumulators.
            dimension_semantics=("parallel", "parallel", "arbitrary"),
            vmem_limit_bytes=vmem_limit,
        ),
    )(x_flat)

    # Tiny host-side concat of the pooled vectors only (N x 2C elements);
    # channel order [max ; avg] matches torch.cat([mp(x), ap(x)], dim=1).
    out = jnp.concatenate([mx_out, av_out], axis=1)   # (N, 2, C)
    return out.reshape(N, 2 * C, 1, 1)


if __name__ == "__main__":
    key = jax.random.PRNGKey(0)
    N, C, H, W = 2, 4, 16, 16
    x = jax.random.normal(key, (N, C, H, W), dtype=jnp.float32)

    out = jax.block_until_ready(adaptive_concat_pool2d(x))

    # reference check in plain JAX
    ref_max = jnp.max(x, axis=(2, 3), keepdims=True)
    ref_avg = jnp.mean(x, axis=(2, 3), keepdims=True)
    ref = jnp.concatenate([ref_max, ref_avg], axis=1)

    assert out.shape == (N, 2 * C, 1, 1), out.shape
    assert jnp.allclose(out, ref, atol=1e-5, rtol=1e-5)

    print("KERNEL_OK")
</pallas_src>

<mosaic_0001>
module attributes {stable_mosaic.version = 11 : i64} {
  func.func @_concat_pool_kernel(%arg0: i32, %arg1: i32, %arg2: i32, %arg3: memref<2x4x256xf32, #tpu.memory_space<vmem>>, %arg4: memref<2x1x4xf32, #tpu.memory_space<vmem>>, %arg5: memref<2x1x4xf32, #tpu.memory_space<vmem>>, %arg6: memref<2x4xf32, #tpu.memory_space<vmem>>, %arg7: memref<2x4xf32, #tpu.memory_space<vmem>>) attributes {dimension_semantics = [#tpu.dimension_semantics<parallel>, #tpu.dimension_semantics<parallel>, #tpu.dimension_semantics<arbitrary>], iteration_bounds = array<i64: 1, 1, 1>, scalar_prefetch = 0 : i64, scratch_operands = 2 : i64, tpu.core_type = #tpu.core_type<tc>, window_params = [{transform_indices = @transform_0, window_bounds = array<i64: 2, 4, 256>}, {transform_indices = @transform_1, window_bounds = array<i64: 2, 1, 4>}, {transform_indices = @transform_2, window_bounds = array<i64: 2, 1, 4>}]} {
    %c0_i32 = arith.constant 0 : i32
    %0 = arith.cmpi eq, %arg2, %c0_i32 : i32
    %1 = arith.extui %0 : i1 to i32
    %c0_i32_0 = arith.constant 0 : i32
    %2 = arith.cmpi ne, %1, %c0_i32_0 : i32
    scf.if %2 {
      %cst_14 = arith.constant 0xFF800000 : f32
      %15 = vector.broadcast %cst_14 : f32 to vector<2x4xf32>
      %c0_15 = arith.constant 0 : index
      %c0_16 = arith.constant 0 : index
      %16 = vector.load %arg6[%c0_15, %c0_16] : memref<2x4xf32, #tpu.memory_space<vmem>>, vector<2x4xf32>
      tpu.vector_store %arg6[%c0_15, %c0_16], %15 {strides = array<i32>} : memref<2x4xf32, #tpu.memory_space<vmem>>, vector<2x4xf32>,
      %cst_17 = arith.constant 0.000000e+00 : f32
      %17 = vector.broadcast %cst_17 : f32 to vector<2x4xf32>
      %c0_18 = arith.constant 0 : index
      %c0_19 = arith.constant 0 : index
      %18 = vector.load %arg7[%c0_18, %c0_19] : memref<2x4xf32, #tpu.memory_space<vmem>>, vector<2x4xf32>
      tpu.vector_store %arg7[%c0_18, %c0_19], %17 {strides = array<i32>} : memref<2x4xf32, #tpu.memory_space<vmem>>, vector<2x4xf32>,
    } else {
    }
    %c0 = arith.constant 0 : index
    %c0_1 = arith.constant 0 : index
    %c0_2 = arith.constant 0 : index
    %3 = vector.load %arg3[%c0, %c0_1, %c0_2] : memref<2x4x256xf32, #tpu.memory_space<vmem>>, vector<2x4x256xf32>
    %c0_3 = arith.constant 0 : index
    %c0_4 = arith.constant 0 : index
    %4 = vector.load %arg6[%c0_3, %c0_4] : memref<2x4xf32, #tpu.memory_space<vmem>>, vector<2x4xf32>
    %cst = arith.constant dense<0xFF800000> : vector<2x4xf32>
    %5 = vector.multi_reduction <maximumf>, %3, %cst [2] : vector<2x4x256xf32> to vector<2x4xf32>
    %6 = arith.maximumf %4, %5 : vector<2x4xf32>
    %c0_5 = arith.constant 0 : index
    %c0_6 = arith.constant 0 : index
    %7 = vector.load %arg6[%c0_5, %c0_6] : memref<2x4xf32, #tpu.memory_space<vmem>>, vector<2x4xf32>
    tpu.vector_store %arg6[%c0_5, %c0_6], %6 {strides = array<i32>} : memref<2x4xf32, #tpu.memory_space<vmem>>, vector<2x4xf32>,
    %c0_7 = arith.constant 0 : index
    %c0_8 = arith.constant 0 : index
    %8 = vector.load %arg7[%c0_7, %c0_8] : memref<2x4xf32, #tpu.memory_space<vmem>>, vector<2x4xf32>
    %cst_9 = arith.constant dense<0.000000e+00> : vector<2x4xf32>
    %9 = vector.multi_reduction <add>, %3, %cst_9 [2] : vector<2x4x256xf32> to vector<2x4xf32>
    %10 = arith.addf %8, %9 : vector<2x4xf32>
    %c0_10 = arith.constant 0 : index
    %c0_11 = arith.constant 0 : index
    %11 = vector.load %arg7[%c0_10, %c0_11] : memref<2x4xf32, #tpu.memory_space<vmem>>, vector<2x4xf32>
    tpu.vector_store %arg7[%c0_10, %c0_11], %10 {strides = array<i32>} : memref<2x4xf32, #tpu.memory_space<vmem>>, vector<2x4xf32>,
    %c0_i32_12 = arith.constant 0 : i32
    %12 = arith.cmpi eq, %arg2, %c0_i32_12 : i32
    %13 = arith.extui %12 : i1 to i32
    %c0_i32_13 = arith.constant 0 : i32
    %14 = arith.cmpi ne, %13, %c0_i32_13 : i32
    scf.if %14 {
      %c0_14 = arith.constant 0 : index
      %c0_15 = arith.constant 0 : index
      %15 = vector.load %arg6[%c0_14, %c0_15] : memref<2x4xf32, #tpu.memory_space<vmem>>, vector<2x4xf32>
      %16 = vector.shape_cast %15 : vector<2x4xf32> to vector<2x1x4xf32>
      %c0_16 = arith.constant 0 : index
      %c0_17 = arith.constant 0 : index
      %c0_18 = arith.constant 0 : index
      %17 = vector.load %arg4[%c0_16, %c0_17, %c0_18] : memref<2x1x4xf32, #tpu.memory_space<vmem>>, vector<2x1x4xf32>
      tpu.vector_store %arg4[%c0_16, %c0_17, %c0_18], %16 {strides = array<i32>} : memref<2x1x4xf32, #tpu.memory_space<vmem>>, vector<2x1x4xf32>,
      %c0_19 = arith.constant 0 : index
      %c0_20 = arith.constant 0 : index
      %18 = vector.load %arg7[%c0_19, %c0_20] : memref<2x4xf32, #tpu.memory_space<vmem>>, vector<2x4xf32>
      %cst_21 = arith.constant 3.906250e-03 : f32
      %19 = vector.broadcast %cst_21 : f32 to vector<2x4xf32>
      %20 = arith.mulf %18, %19 : vector<2x4xf32>
      %21 = vector.shape_cast %20 : vector<2x4xf32> to vector<2x1x4xf32>
      %c0_22 = arith.constant 0 : index
      %c0_23 = arith.constant 0 : index
      %c0_24 = arith.constant 0 : index
      %22 = vector.load %arg5[%c0_22, %c0_23, %c0_24] : memref<2x1x4xf32, #tpu.memory_space<vmem>>, vector<2x1x4xf32>
      tpu.vector_store %arg5[%c0_22, %c0_23, %c0_24], %21 {strides = array<i32>} : memref<2x1x4xf32, #tpu.memory_space<vmem>>, vector<2x1x4xf32>,
    } else {
    }
    return
  }
  func.func @transform_0(%arg0: i32, %arg1: i32, %arg2: i32) -> (i32, i32, i32) {
    %c0_i32 = arith.constant 0 : i32
    return %arg0, %arg1, %arg2 : i32, i32, i32
  }
  func.func @transform_1(%arg0: i32, %arg1: i32, %arg2: i32) -> (i32, i32, i32) {
    %c0_i32 = arith.constant 0 : i32
    %c0_i32_0 = arith.constant 0 : i32
    return %arg0, %c0_i32, %arg1 : i32, i32, i32
  }
  func.func @transform_2(%arg0: i32, %arg1: i32, %arg2: i32) -> (i32, i32, i32) {
    %c0_i32 = arith.constant 0 : i32
    %c0_i32_0 = arith.constant 0 : i32
    return %arg0, %c0_i32, %arg1 : i32, i32, i32
  }
}

</mosaic_0001>

<bundles_post_ra>
// kernel: tpu_custom_call.1
= control target key start
LH: loop header
LB: loop body
LE: loop exit
PB: predicated region body
PF: predicated region fallthrough
CT: control target
= control target key end

     0   :  { %8 = vsyncpa [#allocation5], 0  ;;  %s294_s0 = inlined_call_operand.hbm [shape: f32[2,4,256], index: 0, kind: input, shape index: {}]   ;;  %s295_s1 = inlined_call_operand.hbm [shape: f32[2,1,4], index: 1, kind: output, shape index: {0}]   ;;  %s296_s2 = inlined_call_operand.hbm [shape: f32[2,1,4], index: 2, kind: output, shape index: {1}]  }
   0x1   :  { %9 = vsyncpa [#allocation6], 0 }
   0x2   :  { %10 = vsyncpa [#allocation9], 0  ;;  %s15_s11 = sshll.u32 %s294_s0, 4  ;;  %s245_s12 = smov [#allocation4]   ;;  %s16_s11 = int_to_ptr.hbm [resolvable:$true] %s15_s11 }
   0x3   :  { %s17_s13 = sshll.u32 %s245_s12, 4  ;;  %s246_s14 = smov 128   ;;  %s18_s13 = int_to_ptr.vmem [resolvable:$true] %s17_s13 }
   0x4   :  { %s247_s15 = smov 8  }
   0x5   :  { %23 = dma.hbm_to_vmem [thread:$0]  %s16_s11, 256, %s18_s13, [#allocation5], %s246_s14, %s246_s14, %s247_s15  }
   0x6   :  { %239 = dma.done.wait [#allocation5], 256  }
   0x7   :  { %240 = vsyncadd [#allocation5], 4294967040  ;;  %v35_v0 = vld [vmem:[#allocation4] sm:$0xff]  ;;  %v36_v1 = vld [vmem:[#allocation4 + $0x8] sm:$0xff]  ;;  %vm51_vm0 = vcmask 1043456   ;;  %vm32_vm1 = vcmask 25600   ;;  %v64_v25 = vlaneseq }
   0x8   :  { %40 = vst [vmem:[#allocation1] ss:$2 sm:$0xff] %v35_v0  ;;  %v248_v22 = vmov -inf   ;;  %v249_v23 = vmov 0.0   ;;  %vm68_vm2 = vcmask 1041409   ;;  %s250_s0 = smov [#allocation7]  }
   0x9   :  { %44 = vst [vmem:[#allocation1 + $0x10] ss:$2 sm:$0xff] %v36_v1  ;;  %v65_v26 = vand.u32 127, %v64_v25  ;;  %s125_s16 = sshll.u32 %s250_s0, 4  ;;  %s127_s19 = sshll.u32 %s295_s1, 4  ;;  %vm111_vm3 = vcmask 24576   ;;  %s126_s16 = int_to_ptr.vmem [resolvable:$true] %s125_s16  ;;  %s128_s19 = int_to_ptr.hbm [resolvable:$true] %s127_s19 }
   0xa   :  { %33 = vst.msk [vmem:[#allocation2] sm:$0x3] %vm32_vm1, %v248_v22  ;;  %s251_s20 = smov 16   ;;  %s252_s21 = smov 1  }
   0xb   :  { %34 = vst.msk [vmem:[#allocation3] sm:$0x3] %vm32_vm1, %v249_v23  ;;  %s253_s22 = smov [#allocation8]   ;;  %s140_s25 = sshll.u32 %s296_s2, 4  ;;  %s141_s25 = int_to_ptr.hbm [resolvable:$true] %s140_s25 }
   0xc   :  { %s138_s23 = sshll.u32 %s253_s22, 4  ;;  %s139_s23 = int_to_ptr.vmem [resolvable:$true] %s138_s23 }
   0xf   :  { %v41_v2 = vld.sshfl [vmem:[#allocation1] sm:$0xff pattern:$0x75316420]  ;;  %v42_v3 = vld.sshfl [vmem:[#allocation1 + $0x8] sm:$0xff pattern:$0x75316420] }
  0x10   :  { %v52_v4 = vsel %vm51_vm0, %v41_v2, -inf  ;;  %v53_v5 = vsel %vm51_vm0, %v42_v3, -inf  ;;  %75 = vst [vmem:[#allocation1] ss:$2 sm:$0xff] %v35_v0 }
  0x11   :  { %v54_v6 = vmax.f32 %v52_v4, %v53_v5  ;;  %v45_v7 = vld.sshfl [vmem:[#allocation1 + $0x10] sm:$0xff pattern:$0x75316420]  ;;  %v46_v8 = vld.sshfl [vmem:[#allocation1 + $0x18] sm:$0xff pattern:$0x75316420] }
  0x12   :  { %79 = vst [vmem:[#allocation1 + $0x10] ss:$2 sm:$0xff] %v36_v1  ;;  %v57_v9 = vsel %vm51_vm0, %v45_v7, -inf  ;;  %v58_v10 = vsel %vm51_vm0, %v46_v8, -inf  ;;  %v37_v30 = vld [vmem:[#allocation2] sm:$0x3] }
  0x13   :  { %55 = vmax.xlane.f32.xlu1 %v54_v6  ;;  %v59_v13 = vmax.f32 %v57_v9, %v58_v10  ;;  %v74_v36 = vld [vmem:[#allocation3] sm:$0x3] }
  0x17   :  { %v76_v11 = vld.sshfl [vmem:[#allocation1] sm:$0xff pattern:$0x75316420]  ;;  %v77_v12 = vld.sshfl [vmem:[#allocation1 + $0x8] sm:$0xff pattern:$0x75316420] }
  0x18   :  { %v86_v14 = vsel %vm51_vm0, %v76_v11, 0.0  ;;  %v87_v15 = vsel %vm51_vm0, %v77_v12, 0.0 }
  0x19   :  { %v88_v16 = vadd.f32 %v87_v15, %v86_v14  ;;  %v80_v17 = vld.sshfl [vmem:[#allocation1 + $0x10] sm:$0xff pattern:$0x75316420]  ;;  %v81_v18 = vld.sshfl [vmem:[#allocation1 + $0x18] sm:$0xff pattern:$0x75316420] }
  0x1a   :  { %v91_v19 = vsel %vm51_vm0, %v80_v17, 0.0  ;;  %v92_v20 = vsel %vm51_vm0, %v81_v18, 0.0 }
  0x1b   :  { %89 = vadd.xlane.f32.xlu0 %v88_v16  ;;  %60 = vmax.xlane.f32.xlu1 %v59_v13  ;;  %v93_v21 = vadd.f32 %v92_v20, %v91_v19 }
  0x23   :  { %94 = vadd.xlane.f32.xlu0 %v93_v21 }
  0x86   :  { %v56_v24 = vpop.xlane.xlu1 %55 }
  0x87   :  { %v66_v27 = vperm.slane %v56_v24, %v65_v26 }
  0x8e   :  { %v90_v28 = vpop.xlane.xlu0 %89  ;;  %v61_v29 = vpop.xlane.xlu1 %60 }
  0x8f   :  { %v67_v31 = vperm.slane %v61_v29, %v65_v26  ;;  %v98_v35 = vperm.slane %v90_v28, %v65_v26 }
  0x91   :  { %v69_v32 = vsel %vm68_vm2, %v67_v31, %v66_v27 }
  0x92   :  { %v71_v33 = vmax.f32 %v37_v30, %v69_v32 }
  0x94   :  { %73 = vst.msk [vmem:[#allocation2] sm:$0x3] %vm32_vm1, %v71_v33 }
  0x96   :  { %v95_v34 = vpop.xlane.xlu0 %94 }
  0x97   :  { %v99_v37 = vperm.slane %v95_v34, %v65_v26 }
  0x99   :  { %v100_v38 = vsel %vm68_vm2, %v99_v37, %v98_v35 }
  0x9a   :  { %v102_v39 = vadd.f32 %v100_v38, %v74_v36 }
  0x9b   :  { %v107_v40 = vld [vmem:[#allocation2] sm:$0x3] }
  0x9c   :  { %103 = vst.msk [vmem:[#allocation3] sm:$0x3] %vm32_vm1, %v102_v39  ;;  %v109_v41 = vrot.slane %v107_v40, 1 }
  0x9d   :  { %112 = vst.msk [vmem:[#allocation7] sm:$0x1] %vm111_vm3, %v107_v40 }
  0x9e   :  { %113 = vst.msk [vmem:[#allocation7 + $0x1] sm:$0x1] %vm111_vm3, %v109_v41 }
  0x9f   :  { %133 = dma.vmem_to_hbm [thread:$0]  %s126_s16, 32, %s128_s19, [#allocation6], %s251_s20, %s251_s20, %s252_s21  }
  0xa3   :  { %v114_v42 = vld [vmem:[#allocation3] sm:$0x3] }
  0xa4   :  { %v115_v43 = vmul.f32 0.00390625, %v114_v42 }
  0xa6   :  { %v117_v44 = vrot.slane %v115_v43, 1  ;;  %119 = vst.msk [vmem:[#allocation8] sm:$0x1] %vm111_vm3, %v115_v43 }
  0xa8   :  { %120 = vst.msk [vmem:[#allocation8 + $0x1] sm:$0x1] %vm111_vm3, %v117_v44 }
  0xa9   :  { %146 = dma.vmem_to_hbm [thread:$0]  %s139_s23, 32, %s141_s25, [#allocation9], %s251_s20, %s251_s20, %s252_s21  }
  0xaa   :  { %241 = dma.done.wait [#allocation6], 32  }
  0xab   :  { %242 = vsyncadd [#allocation6], 4294967264 }
  0xac   :  { %243 = dma.done.wait [#allocation9], 32  }
  0xad   :  { %244 = vsyncadd [#allocation9], 4294967264 }
  0xae   :  { %155 = vsyncpa [#allocation5], 1 }
  0xaf   :  { %156 = vsyncpa [#allocation6], 1 }
  0xb0   :  { %157 = vsyncpa [#allocation9], 1 }

</bundles_post_ra>
